<compile_context>
chip_gen: v7x
topology: tpu7x:2x2x1
jax: 0.10.0
libtpu: 0.0.40
codegen_flags: <defaults>
</compile_context>

<pallas_src>
import jax
import jax.numpy as jnp
from jax import lax
from jax.experimental import pallas as pl
from jax.experimental.pallas import tpu as pltpu


def _pad_up(n, m):
    return ((n + m - 1) // m) * m


def _make_mlp_softmax_kernel(activations, real_out):
    """Fused (Linear -> act) * N -> Softmax masked to the first `real_out` lanes."""

    def kernel(x_ref, *refs):
        out_ref = refs[-1]
        param_refs = refs[:-1]          # interleaved (w0, b0, w1, b1, ...)

        h = x_ref[...]                  # (TB, in0_p) f32
        for i, act in enumerate(activations):
            w = param_refs[2 * i][...]       # (in_p, out_p), zero-padded
            b = param_refs[2 * i + 1][...]   # (1, out_p), zero-padded
            # NOTE: for wide (non-toy) layers, cast h/w to bf16 here and keep
            # preferred_element_type=f32 to hit the v6e/v7x MXU bf16 peak.
            h = jnp.dot(h, w, preferred_element_type=jnp.float32) + b
            if act == "relu":
                h = jnp.maximum(h, 0.0)
            elif act == "sigmoid":
                # exp + reciprocal both live on the EUP slot (no VALU divide).
                h = pl.reciprocal(1.0 + jnp.exp(-h), approx=True)
            elif act == "tanh":
                h = jnp.tanh(h)
            # else: unknown activation string -> identity, exactly like the
            # PyTorch module (which only logs a warning).

        # torch.nn.Softmax() on 2-D input -> softmax over dim=1 (features),
        # masked to the real (un-padded) output lanes.
        col = lax.broadcasted_iota(jnp.int32, h.shape, dimension=1)
        valid = col < real_out
        h = jnp.where(valid, h, -1e30)
        m = jnp.max(h, axis=-1, keepdims=True)
        e = jnp.where(valid, jnp.exp(h - m), 0.0)
        denom = jnp.sum(e, axis=-1, keepdims=True)
        out_ref[...] = (e * pl.reciprocal(denom, approx=True)).astype(out_ref.dtype)

    return kernel


def study_ai_forward(x, params, activations, *, tb=512, lane_pad=128):
    """x: (B, in0) f32.  params: list of (W(in,out), b(1,out)).  Returns (B, out_last)."""
    batch, in0 = x.shape
    real_out = params[-1][0].shape[1]

    # ---- lane-dense padding of all feature dims (zeros; semantics preserved) ----
    in0_p = _pad_up(in0, lane_pad)
    padded_params = []
    dims_p = []
    prev_p = in0_p
    for w, b in params:
        din, dout = w.shape
        dout_p = _pad_up(dout, lane_pad)
        w_p = jnp.zeros((prev_p, dout_p), jnp.float32).at[:din, :dout].set(w)
        b_p = jnp.zeros((1, dout_p), jnp.float32).at[:, :dout].set(b)
        padded_params.extend([w_p, b_p])
        dims_p.append((prev_p, dout_p))
        prev_p = dout_p
    out_p = prev_p

    # ---- batch tiling (TB multiple of 8 sublanes) ----
    tb = max(8, min(tb, _pad_up(batch, 8)))
    batch_p = _pad_up(batch, tb)
    x_p = jnp.zeros((batch_p, in0_p), jnp.float32).at[:batch, :in0].set(x)
    grid = (batch_p // tb,)

    # ---- VMEM budget, re-derived from shapes (keeps pipeline depth on v7x) ----
    f32 = 4
    widest = max([in0_p] + [d for _, d in dims_p])
    need = 2 * tb * (in0_p + out_p) * f32                       # double-buffered x/out tiles
    need += sum(2 * (di * do + do) * f32 for di, do in dims_p)  # resident weights/biases
    need += 2 * tb * widest * f32                               # intermediate activations
    vmem_limit = int(min(max(2 * need, 16 * 2**20), 48 * 2**20))

    kernel = _make_mlp_softmax_kernel(tuple(activations), real_out)

    in_specs = [pl.BlockSpec((tb, in0_p), lambda i: (i, 0))]    # x: batch-tiled
    for di, do in dims_p:
        in_specs.append(pl.BlockSpec((di, do), lambda i: (0, 0)))   # weight: VMEM-resident
        in_specs.append(pl.BlockSpec((1, do), lambda i: (0, 0)))    # bias:   VMEM-resident

    out_padded = pl.pallas_call(
        kernel,
        out_shape=jax.ShapeDtypeStruct((batch_p, out_p), jnp.float32),
        grid=grid,
        in_specs=in_specs,
        out_specs=pl.BlockSpec((tb, out_p), lambda i: (i, 0)),
        compiler_params=pltpu.CompilerParams(
            dimension_semantics=("parallel",),   # v7x: shard batch tiles over both TCs
            vmem_limit_bytes=vmem_limit,
        ),
    )(x_p, *padded_params)

    return out_padded[:batch, :real_out]


def init_params(layers_list, key):
    """Deterministic synthetic init (stand-in for torch.nn.Linear defaults)."""
    params = []
    for (fan_in, fan_out, _act) in layers_list:
        key, kw, kb = jax.random.split(key, 3)
        bound = 1.0 / jnp.sqrt(jnp.float32(fan_in))
        # Stored pre-transposed: (in, out) == torch W.T
        w = jax.random.uniform(kw, (fan_in, fan_out), jnp.float32, -bound, bound)
        b = jax.random.uniform(kb, (1, fan_out), jnp.float32, -bound, bound)
        params.append((w, b))
    return params


def _reference(x, params, activations):
    """Pure-JAX reference of the torch forward pass."""
    h = x
    for (w, b), act in zip(params, activations):
        h = h @ w + b
        if act == "relu":
            h = jnp.maximum(h, 0.0)
        elif act == "sigmoid":
            h = jax.nn.sigmoid(h)
        elif act == "tanh":
            h = jnp.tanh(h)
    return jax.nn.softmax(h, axis=-1)


if __name__ == "__main__":
    # TODO(synk): the module's Python logging to NetArchitecture.log is
    # host-side construction bookkeeping with no kernel equivalent.
    layers_list = [
        (32, 64, "relu"),
        (64, 64, "tanh"),
        (64, 16, "sigmoid"),
    ]
    activations = [l[2] for l in layers_list]

    key = jax.random.PRNGKey(0)
    key, kx = jax.random.split(key)

    batch = 512
    x = jax.random.normal(kx, (batch, layers_list[0][0]), jnp.float32)
    params = init_params(layers_list, key)

    out = study_ai_forward(x, params, activations, tb=128)
    out = jax.block_until_ready(out)

    ref = _reference(x, params, activations)

    assert out.shape == (batch, layers_list[-1][1])
    # Softmax rows sum to 1 (loose tol: approx EUP reciprocal).
    assert bool(jnp.all(jnp.abs(jnp.sum(out, axis=-1) - 1.0) < 5e-3))
    # Match the pure-JAX reference.
    assert bool(jnp.max(jnp.abs(out - ref)) < 3e-3)

    print("KERNEL_OK")
</pallas_src>

<mosaic_0001>
module attributes {stable_mosaic.version = 11 : i64} {
  func.func @kernel(%arg0: i32, %arg1: memref<128x128xf32, #tpu.memory_space<vmem>>, %arg2: memref<128x128xf32, #tpu.memory_space<vmem>>, %arg3: memref<1x128xf32, #tpu.memory_space<vmem>>, %arg4: memref<128x128xf32, #tpu.memory_space<vmem>>, %arg5: memref<1x128xf32, #tpu.memory_space<vmem>>, %arg6: memref<128x128xf32, #tpu.memory_space<vmem>>, %arg7: memref<1x128xf32, #tpu.memory_space<vmem>>, %arg8: memref<128x128xf32, #tpu.memory_space<vmem>>) attributes {dimension_semantics = [#tpu.dimension_semantics<parallel>], iteration_bounds = array<i64: 4>, scalar_prefetch = 0 : i64, scratch_operands = 0 : i64, tpu.core_type = #tpu.core_type<tc>, window_params = [{transform_indices = @transform_0, window_bounds = array<i64: 128, 128>}, {pipeline_mode = #tpu.pipeline_mode<synchronous>, transform_indices = @transform_1, window_bounds = array<i64: 128, 128>}, {pipeline_mode = #tpu.pipeline_mode<synchronous>, transform_indices = @transform_2, window_bounds = array<i64: 1, 128>}, {pipeline_mode = #tpu.pipeline_mode<synchronous>, transform_indices = @transform_3, window_bounds = array<i64: 128, 128>}, {pipeline_mode = #tpu.pipeline_mode<synchronous>, transform_indices = @transform_4, window_bounds = array<i64: 1, 128>}, {pipeline_mode = #tpu.pipeline_mode<synchronous>, transform_indices = @transform_5, window_bounds = array<i64: 128, 128>}, {pipeline_mode = #tpu.pipeline_mode<synchronous>, transform_indices = @transform_6, window_bounds = array<i64: 1, 128>}, {transform_indices = @transform_7, window_bounds = array<i64: 128, 128>}]} {
    %c0 = arith.constant 0 : index
    %c0_0 = arith.constant 0 : index
    %0 = vector.load %arg1[%c0, %c0_0] : memref<128x128xf32, #tpu.memory_space<vmem>>, vector<128x128xf32>
    %c0_1 = arith.constant 0 : index
    %c0_2 = arith.constant 0 : index
    %1 = vector.load %arg2[%c0_1, %c0_2] : memref<128x128xf32, #tpu.memory_space<vmem>>, vector<128x128xf32>
    %c0_3 = arith.constant 0 : index
    %c0_4 = arith.constant 0 : index
    %2 = vector.load %arg3[%c0_3, %c0_4] : memref<1x128xf32, #tpu.memory_space<vmem>>, vector<1x128xf32>
    %cst = arith.constant dense<0.000000e+00> : vector<128x128xf32>
    %3 = tpu.matmul %0, %1, %cst {dimension_numbers = #tpu.dot_dimension_numbers<[1], [0], [0], [1], [0, 0, 1, 1], [], []>} : vector<128x128xf32>, vector<128x128xf32>, vector<128x128xf32> -> vector<128x128xf32>
    %4 = vector.broadcast %2 : vector<1x128xf32> to vector<128x128xf32>
    %5 = arith.addf %3, %4 : vector<128x128xf32>
    %cst_5 = arith.constant 0.000000e+00 : f32
    %6 = vector.broadcast %cst_5 : f32 to vector<128x128xf32>
    %7 = arith.maximumf %5, %6 : vector<128x128xf32>
    %c0_6 = arith.constant 0 : index
    %c0_7 = arith.constant 0 : index
    %8 = vector.load %arg4[%c0_6, %c0_7] : memref<128x128xf32, #tpu.memory_space<vmem>>, vector<128x128xf32>
    %c0_8 = arith.constant 0 : index
    %c0_9 = arith.constant 0 : index
    %9 = vector.load %arg5[%c0_8, %c0_9] : memref<1x128xf32, #tpu.memory_space<vmem>>, vector<1x128xf32>
    %cst_10 = arith.constant dense<0.000000e+00> : vector<128x128xf32>
    %10 = tpu.matmul %7, %8, %cst_10 {dimension_numbers = #tpu.dot_dimension_numbers<[1], [0], [0], [1], [0, 0, 1, 1], [], []>} : vector<128x128xf32>, vector<128x128xf32>, vector<128x128xf32> -> vector<128x128xf32>
    %11 = vector.broadcast %9 : vector<1x128xf32> to vector<128x128xf32>
    %12 = arith.addf %10, %11 : vector<128x128xf32>
    %13 = math.tanh %12 : vector<128x128xf32>
    %c0_11 = arith.constant 0 : index
    %c0_12 = arith.constant 0 : index
    %14 = vector.load %arg6[%c0_11, %c0_12] : memref<128x128xf32, #tpu.memory_space<vmem>>, vector<128x128xf32>
    %c0_13 = arith.constant 0 : index
    %c0_14 = arith.constant 0 : index
    %15 = vector.load %arg7[%c0_13, %c0_14] : memref<1x128xf32, #tpu.memory_space<vmem>>, vector<1x128xf32>
    %cst_15 = arith.constant dense<0.000000e+00> : vector<128x128xf32>
    %16 = tpu.matmul %13, %14, %cst_15 {dimension_numbers = #tpu.dot_dimension_numbers<[1], [0], [0], [1], [0, 0, 1, 1], [], []>} : vector<128x128xf32>, vector<128x128xf32>, vector<128x128xf32> -> vector<128x128xf32>
    %17 = vector.broadcast %15 : vector<1x128xf32> to vector<128x128xf32>
    %18 = arith.addf %16, %17 : vector<128x128xf32>
    %cst_16 = arith.constant 0.000000e+00 : f32
    %19 = vector.broadcast %cst_16 : f32 to vector<128x128xf32>
    %20 = arith.subf %19, %18 : vector<128x128xf32>
    %21 = math.exp %20 : vector<128x128xf32>
    %cst_17 = arith.constant 1.000000e+00 : f32
    %22 = vector.broadcast %cst_17 : f32 to vector<128x128xf32>
    %23 = arith.addf %22, %21 : vector<128x128xf32>
    %24 = tpu.reciprocal %23 {approx = true} : vector<128x128xf32> -> vector<128x128xf32>
    %25 = tpu.iota {dimensions = array<i32: 1>} : vector<128x128xi32>
    %c16_i32 = arith.constant 16 : i32
    %26 = vector.broadcast %c16_i32 : i32 to vector<128x128xi32>
    %27 = arith.cmpi slt, %25, %26 : vector<128x128xi32>
    %cst_18 = arith.constant -1.000000e+30 : f32
    %28 = vector.broadcast %cst_18 : f32 to vector<128x128xf32>
    %29 = arith.select %27, %24, %28 : vector<128x128xi1>, vector<128x128xf32>
    %cst_19 = arith.constant dense<0xFF800000> : vector<128xf32>
    %30 = vector.multi_reduction <maximumf>, %29, %cst_19 [1] : vector<128x128xf32> to vector<128xf32>
    %31 = vector.shape_cast %30 : vector<128xf32> to vector<128x1xf32>
    %32 = vector.broadcast %31 : vector<128x1xf32> to vector<128x128xf32>
    %33 = arith.subf %29, %32 : vector<128x128xf32>
    %34 = math.exp %33 : vector<128x128xf32>
    %cst_20 = arith.constant 0.000000e+00 : f32
    %35 = vector.broadcast %cst_20 : f32 to vector<128x128xf32>
    %36 = arith.select %27, %34, %35 : vector<128x128xi1>, vector<128x128xf32>
    %cst_21 = arith.constant dense<0.000000e+00> : vector<128xf32>
    %37 = vector.multi_reduction <add>, %36, %cst_21 [1] : vector<128x128xf32> to vector<128xf32>
    %38 = vector.shape_cast %37 : vector<128xf32> to vector<128x1xf32>
    %39 = tpu.reciprocal %38 {approx = true} : vector<128x1xf32> -> vector<128x1xf32>
    %40 = vector.broadcast %39 : vector<128x1xf32> to vector<128x128xf32>
    %41 = arith.mulf %36, %40 : vector<128x128xf32>
    %c0_22 = arith.constant 0 : index
    %c0_23 = arith.constant 0 : index
    %42 = vector.load %arg8[%c0_22, %c0_23] : memref<128x128xf32, #tpu.memory_space<vmem>>, vector<128x128xf32>
    tpu.vector_store %arg8[%c0_22, %c0_23], %41 {strides = array<i32>} : memref<128x128xf32, #tpu.memory_space<vmem>>, vector<128x128xf32>,
    return
  }
  func.func @transform_0(%arg0: i32) -> (i32, i32) {
    %c0_i32 = arith.constant 0 : i32
    %c0_i32_0 = arith.constant 0 : i32
    return %arg0, %c0_i32 : i32, i32
  }
  func.func @transform_1(%arg0: i32) -> (i32, i32) {
    %c0_i32 = arith.constant 0 : i32
    %c0_i32_0 = arith.constant 0 : i32
    %c0_i32_1 = arith.constant 0 : i32
    return %c0_i32, %c0_i32_0 : i32, i32
  }
  func.func @transform_2(%arg0: i32) -> (i32, i32) {
    %c0_i32 = arith.constant 0 : i32
    %c0_i32_0 = arith.constant 0 : i32
    %c0_i32_1 = arith.constant 0 : i32
    return %c0_i32, %c0_i32_0 : i32, i32
  }
  func.func @transform_3(%arg0: i32) -> (i32, i32) {
    %c0_i32 = arith.constant 0 : i32
    %c0_i32_0 = arith.constant 0 : i32
    %c0_i32_1 = arith.constant 0 : i32
    return %c0_i32, %c0_i32_0 : i32, i32
  }
  func.func @transform_4(%arg0: i32) -> (i32, i32) {
    %c0_i32 = arith.constant 0 : i32
    %c0_i32_0 = arith.constant 0 : i32
    %c0_i32_1 = arith.constant 0 : i32
    return %c0_i32, %c0_i32_0 : i32, i32
  }
  func.func @transform_5(%arg0: i32) -> (i32, i32) {
    %c0_i32 = arith.constant 0 : i32
    %c0_i32_0 = arith.constant 0 : i32
    %c0_i32_1 = arith.constant 0 : i32
    return %c0_i32, %c0_i32_0 : i32, i32
  }
  func.func @transform_6(%arg0: i32) -> (i32, i32) {
    %c0_i32 = arith.constant 0 : i32
    %c0_i32_0 = arith.constant 0 : i32
    %c0_i32_1 = arith.constant 0 : i32
    return %c0_i32, %c0_i32_0 : i32, i32
  }
  func.func @transform_7(%arg0: i32) -> (i32, i32) {
    %c0_i32 = arith.constant 0 : i32
    %c0_i32_0 = arith.constant 0 : i32
    return %arg0, %c0_i32 : i32, i32
  }
}

</mosaic_0001>

<bundles_post_ra>
// kernel: tpu_custom_call.1
= control target key start
LH: loop header
LB: loop body
LE: loop exit
PB: predicated region body
PF: predicated region fallthrough
CT: control target
= control target key end

     0   :  { %12 = vsyncpa [#allocation3], 0  ;;  %s2735_s0 = inlined_call_operand.hbm [shape: f32[512,128], index: 0, kind: input, shape index: {}]   ;;  %s2736_s1 = inlined_call_operand.hbm [shape: f32[128,128], index: 1, kind: input, shape index: {}]   ;;  %s2737_s2 = inlined_call_operand.vmem [shape: f32[1,128], index: 2, kind: input, shape index: {}]   ;;  %s2738_s3 = inlined_call_operand.hbm [shape: f32[128,128], index: 3, kind: input, shape index: {}]   ;;  %s2739_s4 = inlined_call_operand.vmem [shape: f32[1,128], index: 4, kind: input, shape index: {}]   ;;  %s2740_s5 = inlined_call_operand.hbm [shape: f32[128,128], index: 5, kind: input, shape index: {}]   ;;  %s2741_s6 = inlined_call_operand.vmem [shape: f32[1,128], index: 6, kind: input, shape index: {}]   ;;  %s2742_s7 = inlined_call_operand.hbm [shape: f32[512,128], index: 7, kind: output, shape index: {}]  }
   0x1   :  { %14 = vsyncpa [#allocation3 + $0x1], 0 }
   0x2   :  { %15 = vsyncpa [#allocation6], 0 }
   0x3   :  { %16 = vsyncpa [#allocation9], 0 }
   0x4   :  { %17 = vsyncpa [#allocation4], 0 }
   0x5   :  { %19 = vsyncpa [#allocation4 + $0x1], 0  ;;  %s2167_s24 = smov 0   ;;  %s2169_s25 = smov 0  }
   0x6   :  { %s2171_s26 = smov 0   ;;  %s2173_s27 = smov 0  }
   0x7 LB: > { %s2188_s28 = sadd.s32 4294967295, %s2116_s27   ;;  %s1286_s29 = sadd.s32 4294967294, %s2116_s27   ;;  %s2116_s27 = sphi %s2173_s27, %s2767_s27   ;;  %s2112_s26 = sphi %s2171_s26, %s2766_s26   ;;  %s2108_s25 = sphi %s2169_s25, %s2765_s25   ;;  %s2104_s24 = sphi %s2167_s24, %s2764_s24  }
   0x8   : > { %p45_p0 = scmp.ne.s32.totalorder %s2108_s25, %s2104_s24  ;;  %p2743_p1 = scmp.eq.s32.totalorder %s2188_s28, 0 }
   0x9   : > { %p201_p3 = scmp.eq.s32.totalorder %s1286_s29, 3  ;;  %p1287_p5 = scmp.ge.s32.totalorder %s2116_s27, 1 }
   0xa   : > { %p2197_p4 = por %p2743_p1, %p45_p0  ;;  %p208_p7 = scmp.lt.s32.totalorder %s2116_s27, 5 }
   0xb   : > { %p2202_p6 = por %p201_p3, %p45_p0  ;;  %s2118_s10 = smov [#allocation5]  }
   0xc   : > { %s2747_s30 = scalar_select %p2197_p4, 1, 0 }
   0xd   : > { %s2748_s8 = scalar_select %p2202_p6, 1, 0 }
   0xe   : > { %p2207_p8 = pnand %p1287_p5, %p208_p7  ;;  %s220_s11 = sshll.u32 %s2118_s10, 4  ;;  %s2211_s11 = int_to_ptr.vmem [resolvable:$true] %s220_s11 }
   0xf   : > { %2749 = sst [smem:[#allocation15_spill]] %s2748_s8  ;;  %s2119_s13 = smov [#allocation7]  }
  0x10   : > { %s2750_s9 = scalar_select %p2207_p8, 1, 0 }
  0x11   : > { %p1703_p9 = pneg %p2207_p8  ;;  %s236_s14 = sshll.u32 %s2119_s13, 4  ;;  %s2221_s14 = int_to_ptr.vmem [resolvable:$true] %s236_s14 }
  0x12   : > { %s2120_s15 = smov [#allocation8]   ;;  %s1928_s19 = scalar_lea.hbm %s2736_s1, 2048 }
  0x13   : > { %p2217_p10 = pnand %p1703_p9, %p2743_p1  ;;  %s2223_s16 = sshll.u32 %s2120_s15, 4  ;;  %s253_s16 = int_to_ptr.vmem [resolvable:$true] %s2223_s16 }
  0x14   : > { %p1929_p11 = scmp.ne.s32.totalorder %s2736_s1, %s1928_s19  ;;  %p1935_p3 = scmp.lt.u32.totalorder %s1928_s19, %s2736_s1 }
  0x15   : > { %p2233_p12 = pneg %p2217_p10 }
  0x17   : > { %p1931_p13 = pnand %p2233_p12, %p1929_p11 }
  0x19   : > { %p1932_p0 = pneg %p1931_p13 }
  0x1b   : > { %p1937_p5 = pnand %p1935_p3, %p1932_p0 }
  0x1d   : > { %1940 = shalt.err (!%p1937_p5)
}
  0x1e   : > { %s1941_s10 = scalar_lea.vmem %s2211_s11, 2048  ;;  %p1949_p2 = scmp.lt.s32.totalorder %s2211_s11, %s2211_s11 }
  0x1f   : > { %p1942_p7 = scmp.ne.s32.totalorder %s2211_s11, %s1941_s10  ;;  %p1950_p6 = scmp.lt.s32.totalorder %s1941_s10, %s1941_s10 }
  0x21   : > { %p1944_p9 = pnand %p1942_p7, %p2233_p12  ;;  %p1951_p11 = por %p1950_p6, %p1949_p2 }
  0x23   : > { %p1945_p1 = pneg %p1944_p9 }
  0x25   : > { %p1952_p13 = pnand %p1951_p11, %p1945_p1 }
  0x27   : > { %1955 = shalt.err (!%p1952_p13)
}
  0x28   : > { %s2121_s13 = smov 128   ;;  %s2122_s15 = smov 8  }
  0x29   : > { %1706 = dma.hbm_to_vmem [thread:$0]  (!%p2217_p10), %s2736_s1, 2048, %s2211_s11, [#allocation6], %s2121_s13, %s2121_s13, %s2122_s15  }
  0x2a   : > { %s1956_s21 = scalar_lea.hbm %s2738_s3, 2048 }
  0x2b   : > { %p1957_p1 = scmp.ne.s32.totalorder %s2738_s3, %s1956_s21  ;;  %p1963_p0 = scmp.lt.u32.totalorder %s1956_s21, %s2738_s3 }
  0x2d   : > { %p1959_p2 = pnand %p1957_p1, %p2233_p12 }
  0x2f   : > { %p1960_p6 = pneg %p1959_p2 }
  0x31   : > { %p1965_p3 = pnand %p1963_p0, %p1960_p6 }
  0x33   : > { %1968 = shalt.err (!%p1965_p3)
}
  0x34   : > { %s1969_s11 = scalar_lea.vmem %s2221_s14, 2048  ;;  %p1977_p11 = scmp.lt.s32.totalorder %s2221_s14, %s2221_s14 }
  0x35   : > { %p1970_p5 = scmp.ne.s32.totalorder %s2221_s14, %s1969_s11  ;;  %p1978_p13 = scmp.lt.s32.totalorder %s1969_s11, %s1969_s11 }
  0x37   : > { %p1972_p7 = pnand %p1970_p5, %p2233_p12  ;;  %p1979_p1 = por %p1978_p13, %p1977_p11 }
  0x39   : > { %p1973_p9 = pneg %p1972_p7 }
  0x3b   : > { %p1980_p2 = pnand %p1979_p1, %p1973_p9 }
  0x3d   : > { %1983 = shalt.err (!%p1980_p2)
}
  0x3e   : > { %1709 = dma.hbm_to_vmem [thread:$0]  (!%p2217_p10), %s2738_s3, 2048, %s2221_s14, [#allocation6], %s2121_s13, %s2121_s13, %s2122_s15  }
  0x3f   : > { %s1984_s20 = scalar_lea.hbm %s2740_s5, 2048 }
  0x40   : > { %p1985_p6 = scmp.ne.s32.totalorder %s2740_s5, %s1984_s20  ;;  %p1991_p5 = scmp.lt.u32.totalorder %s1984_s20, %s2740_s5 }
  0x42   : > { %p1987_p0 = pnand %p1985_p6, %p2233_p12 }
  0x44   : > { %p1988_p3 = pneg %p1987_p0 }
  0x46   : > { %p1993_p7 = pnand %p1991_p5, %p1988_p3 }
  0x48   : > { %1996 = shalt.err (!%p1993_p7)
}
  0x49   : > { %s1997_s11 = scalar_lea.vmem %s253_s16, 2048  ;;  %p2005_p1 = scmp.lt.s32.totalorder %s253_s16, %s253_s16 }
  0x4a   : > { %p1998_p9 = scmp.ne.s32.totalorder %s253_s16, %s1997_s11  ;;  %p2006_p2 = scmp.lt.s32.totalorder %s1997_s11, %s1997_s11 }
  0x4c   : > { %p2000_p11 = pnand %p1998_p9, %p2233_p12  ;;  %p2007_p4 = por %p2006_p2, %p2005_p1 }
  0x4e   : > { %p2001_p13 = pneg %p2000_p11 }
  0x50   : > { %p2008_p8 = pnand %p2007_p4, %p2001_p13 }
  0x52   : > { %2011 = shalt.err (!%p2008_p8)
}
  0x53   : > { %1712 = dma.hbm_to_vmem [thread:$0]  (!%p2217_p10), %s2740_s5, 2048, %s253_s16, [#allocation9], %s2121_s13, %s2121_s13, %s2122_s15  }
  0x54   : > { %s2306_s22 = sadd.s32 1, %s2116_s27   ;;  %s32_s17 = sadd.s32 1, %s2112_s26 }
  0x55   : > { %s29_s12 = ssub.s32 %s2116_s27, %s2306_s22  ;;  %p39_p8 = scmp.ne.s32.totalorder %s2112_s26, %s2108_s25 }
  0x56   : > { %p30_p4 = scmp.eq.s32.totalorder %s29_s12, 0  ;;  %p40_p12 = scmp.eq.s32.totalorder %s2116_s27, 0 }
  0x57   : > { %p1724_p6 = scmp.lt.s32.totalorder %s2116_s27, 4  ;;  %p2753_p3 = scmp.eq.s32.totalorder %s2188_s28, 3 }
  0x58   : > { %s2316_s18 = scalar_select %p30_p4, %s2112_s26, %s32_s17  }
  0x59   : > { %p41_p0 = por %p40_p12, %p39_p8  ;;  %p2320_p5 = por %p2753_p3, %p39_p8 }
  0x5a   : > { %s269_s20 = sand.u32 1, %s2112_s26   ;;  %s1309_s21 = sshll.u32 %s2116_s27, 11 }
  0x5b   : > { %s1292_s16 = sshll.u32 %s269_s20, 7  ;;  %s2329_s10 = scalar_lea.hbm %s2735_s0, %s1309_s21 }
  0x5c   : > { %s273_s11 = scalar_lea.vmem [#allocation2], %s1292_s16  ;;  %p2331_p10 = pnand %p1724_p6, %p41_p0 }
  0x5d   : > { %s280_s14 = sshll.u32 %s273_s11, 4  ;;  %s2337_s12 = scalar_lea.sflag [#allocation3], %s269_s20  ;;  %s2335_s14 = int_to_ptr.vmem [resolvable:$true] %s280_s14 }
  0x5e   : > { %s2012_s17 = scalar_lea.hbm %s2329_s10, 2048  ;;  %p2014_p9 = pneg %p2331_p10 }
  0x5f   : > { %p2013_p7 = scmp.ne.s32.totalorder %s2329_s10, %s2012_s17  ;;  %s2017_s23 = scalar_lea.hbm %s2735_s0, 8192 }
  0x60   : > { %p2018_p1 = scmp.lt.u32.totalorder %s2329_s10, %s2735_s0  ;;  %p2019_p2 = scmp.lt.u32.totalorder %s2017_s23, %s2012_s17 }
  0x61   : > { %p2015_p11 = pnand %p2014_p9, %p2013_p7  ;;  %p2021_p8 = scmp.lt.u32.totalorder %s2012_s17, %s2329_s10 }
  0x62   : > { %p2020_p4 = por %p2019_p2, %p2018_p1 }
  0x63   : > { %p2016_p13 = pneg %p2015_p11 }
  0x64   : > { %p2022_p12 = por %p2021_p8, %p2020_p4 }
  0x66   : > { %p2023_p6 = pnand %p2022_p12, %p2016_p13 }
  0x68   : > { %2026 = shalt.err (!%p2023_p6)
}
  0x69   : > { %s2027_s20 = scalar_lea.vmem %s2335_s14, 2048  ;;  %s2123_s21 = smov [#allocation2]  }
  0x6a   : > { %p2028_p0 = scmp.ne.s32.totalorder %s2335_s14, %s2027_s20  ;;  %s2032_s16 = sshll.u32 %s2123_s21, 4  ;;  %s2033_s16 = int_to_ptr.vmem [resolvable:$false] %s2032_s16 }
  0x6b   : > { %s2034_s29 = scalar_lea.vmem %s2033_s16, 4096  ;;  %p2035_p11 = scmp.lt.s32.totalorder %s2335_s14, %s2033_s16 }
  0x6c   : > { %p2030_p3 = pnand %p2028_p0, %p2014_p9  ;;  %p2036_p1 = scmp.lt.s32.totalorder %s2034_s29, %s2027_s20 }
  0x6e   : > { %p2031_p7 = pneg %p2030_p3  ;;  %p2037_p2 = por %p2036_p1, %p2035_p11 }
  0x70   : > { %p2038_p4 = pnand %p2037_p2, %p2031_p7 }
  0x72   : > { %2041 = shalt.err (!%p2038_p4)
}
  0x73   : > { %1716 = dma.hbm_to_vmem [thread:$0]  (!%p2331_p10), %s2329_s10, 2048, %s2335_s14, %s2337_s12, %s2121_s13, %s2121_s13, %s2122_s15  }
  0x74   : > { %p2756_p9 = scmp.ne.s32.totalorder %s2750_s9, 0 }
  0x75   : > { %s2371_s17 = sand.u32 (!%p2756_p9), 1, %s2108_s25   ;;  %p2757_p13 = scmp.ne.s32.totalorder (!%p2756_p9), %s2747_s30, 0 }
  0x76   : > { %292 = sbr.rel (%p2756_p9) target bundleno = 1217 (0x4c1), region = 48  ;;  %s1296_s23 = sshll.u32 (!%p2756_p9), %s2371_s17, 7 }
  0x77   : > { %s295_s11 = scalar_lea.sflag (!%p2756_p9), [#allocation3], %s2371_s17  ;;  %s2377_s8 = scalar_lea.vmem (!%p2756_p9), [#allocation2], %s1296_s23 }
  0x7d   : > { %2087 = dma.done.wait (%p2757_p13), %s295_s11, 2048  }
  0x7e   : > { %2089 = vsyncadd (%p2757_p13), %s295_s11, 4294965248  ;;  %p2758_p10 = scmp.eq.s32.totalorder %s2188_s28, 0 }
  0x80   : > { %2091 = dma.done.wait (%p2758_p10), [#allocation6], 4096   ;;  %p2759_p8 = pmov %p2758_p10 }
  0x82   : > { %2093 = vsyncadd (%p2759_p8), [#allocation6], 4294963200  ;;  %p2760_p12 = pmov %p2759_p8 }
  0x83   : > { %p2761_p6 = pmov %p2759_p8 }
  0x84   : > { %2095 = dma.done.wait (%p2760_p12), [#allocation9], 2048  }
  0x85   : > { %2097 = vsyncadd (%p2761_p6), [#allocation9], 4294965248  ;;  %v359_v0 = vld [vmem:[#allocation5] sm:$0xff]  ;;  %v360_v1 = vld [vmem:[#allocation5 + $0x8] sm:$0xff]  ;;  %s2652_s12 = scalar_lea.vmem [#allocation10], %s1296_s23  ;;  %s1310_s20 = sshll.u32 %s2188_s28, 11 }
  0x86   : > { %v361_v2 = vld [vmem:[#allocation5 + $0x10] sm:$0xff]  ;;  %v1575_v3 = vpack.c.bf16 %v360_v1, %v359_v0  ;;  %v362_v4 = vld [vmem:[#allocation5 + $0x18] sm:$0xff]  ;;  %v363_v6 = vld [vmem:[#allocation5 + $0x20] sm:$0xff]  ;;  %s1184_s21 = sshll.u32 %s2652_s12, 4  ;;  %s2687_s23 = scalar_lea.hbm %s2742_s7, %s1310_s20  ;;  %s2689_s21 = int_to_ptr.vmem [resolvable:$true] %s1184_s21 }
  0x87   : > { %v1579_v5 = vpack.c.bf16 %v362_v4, %v361_v2  ;;  %v364_v7 = vld [vmem:[#allocation5 + $0x28] sm:$0xff]  ;;  %v343_v9 = vld [vmem:[%s2377_s8] sm:$0xff]  ;;  %v365_v10 = vld [vmem:[#allocation5 + $0x30] sm:$0xff]  ;;  %s1171_s28 = scalar_lea.sflag [#allocation4], %s2371_s17  ;;  %s2042_s11 = scalar_lea.vmem %s2689_s21, 2048 }
  0x88   : > { %1576 = vmatprep.subr.bf16.mxu0 %v1575_v3  ;;  %v1583_v8 = vpack.c.bf16 %v364_v7, %v363_v6  ;;  %v366_v11 = vld [vmem:[#allocation5 + $0x38] sm:$0xff]  ;;  %1439 = vmatprep.mubr.f32.mxu0 %v343_v9  ;;  %v367_v13 = vld [vmem:[#allocation5 + $0x40] sm:$0xff]  ;;  %v368_v14 = vld [vmem:[#allocation5 + $0x48] sm:$0xff]  ;;  %p2043_p0 = scmp.ne.s32.totalorder %s2689_s21, %s2042_s11 }
  0x89   : > { %1578 = vmatpush3.bf16.msra.mxu0 %v1575_v3  ;;  %v1587_v12 = vpack.c.bf16 %v366_v11, %v365_v10  ;;  %v543_v15 = vld [vmem:[#allocation7] sm:$0xff]  ;;  %v544_v16 = vld [vmem:[#allocation7 + $0x8] sm:$0xff]  ;;  %v545_v17 = vld [vmem:[#allocation7 + $0x10] sm:$0xff]  ;;  %v1591_v21 = vpack.c.bf16 %v368_v14, %v367_v13 }
  0x8a   : > { %1580 = vmatprep.subr.bf16.mxu0 %v1579_v5  ;;  %v546_v18 = vld [vmem:[#allocation7 + $0x18] sm:$0xff]  ;;  %v1607_v19 = vpack.c.bf16 %v544_v16, %v543_v15  ;;  %v547_v22 = vld [vmem:[#allocation7 + $0x20] sm:$0xff]  ;;  %v548_v23 = vld [vmem:[#allocation7 + $0x28] sm:$0xff]  ;;  %p2044_p3 = pnand %p2043_p0, %p2320_p5 }
  0x8b   : > { %v1611_v20 = vpack.c.bf16 %v546_v18, %v545_v17  ;;  %v369_v24 = vld [vmem:[#allocation5 + $0x50] sm:$0xff]  ;;  %v370_v25 = vld [vmem:[#allocation5 + $0x58] sm:$0xff]  ;;  %v1615_v26 = vpack.c.bf16 %v548_v23, %v547_v22  ;;  %v371_v30 = vld [vmem:[#allocation5 + $0x60] sm:$0xff] }
  0x8c   : > { %1608 = vmatprep.subr.bf16.mxu1 %v1607_v19  ;;  %v1595_v27 = vpack.c.bf16 %v370_v25, %v369_v24  ;;  %v549_v28 = vld [vmem:[#allocation7 + $0x30] sm:$0xff]  ;;  %v550_v29 = vld [vmem:[#allocation7 + $0x38] sm:$0xff]  ;;  %v372_v31 = vld [vmem:[#allocation5 + $0x68] sm:$0xff]  ;;  %p2045_p7 = pneg %p2044_p3 }
  0x8d   : > { %1582 = vmatpush3.bf16.msra.mxu0 %v1579_v5  ;;  %1610 = vmatpush3.bf16.msra.mxu1 %v1607_v19  ;;  %v1619_v32 = vpack.c.bf16 %v550_v29, %v549_v28  ;;  %v1599_v33 = vpack.c.bf16 %v372_v31, %v371_v30  ;;  %v551_v34 = vld [vmem:[#allocation7 + $0x40] sm:$0xff]  ;;  %v552_v35 = vld [vmem:[#allocation7 + $0x48] sm:$0xff]  ;;  %v373_v36 = vld [vmem:[#allocation5 + $0x70] sm:$0xff] }
  0x8e   : > { %1584 = vmatprep.subr.bf16.mxu0 %v1583_v8  ;;  %1612 = vmatprep.subr.bf16.mxu1 %v1611_v20  ;;  %v374_v37 = vld [vmem:[#allocation5 + $0x78] sm:$0xff]  ;;  %v1623_v38 = vpack.c.bf16 %v552_v35, %v551_v34  ;;  %v553_v40 = vld [vmem:[#allocation7 + $0x50] sm:$0xff]  ;;  %v555_v43 = vld [vmem:[#allocation7 + $0x60] sm:$0xff] }
  0x8f   : > { %v1603_v39 = vpack.c.bf16 %v374_v37, %v373_v36  ;;  %v554_v41 = vld [vmem:[#allocation7 + $0x58] sm:$0xff]  ;;  %v556_v44 = vld [vmem:[#allocation7 + $0x68] sm:$0xff]  ;;  %v345_v47 = vld [vmem:[%s2377_s8 + $0x10] sm:$0xff] }
  0x90   : > { %v1627_v42 = vpack.c.bf16 %v554_v41, %v553_v40  ;;  %v344_v45 = vld [vmem:[%s2377_s8 + $0x8] sm:$0xff]  ;;  %v1631_v46 = vpack.c.bf16 %v556_v44, %v555_v43  ;;  %v346_v48 = vld [vmem:[%s2377_s8 + $0x18] sm:$0xff]  ;;  %v347_v49 = vld [vmem:[%s2377_s8 + $0x20] sm:$0xff] }
  0x91   : > { %1586 = vmatpush3.bf16.msra.mxu0 %v1583_v8  ;;  %1614 = vmatpush3.bf16.msra.mxu1 %v1611_v20  ;;  %v348_v50 = vld [vmem:[%s2377_s8 + $0x28] sm:$0xff]  ;;  %v349_v51 = vld [vmem:[%s2377_s8 + $0x30] sm:$0xff]  ;;  %v350_v52 = vld [vmem:[%s2377_s8 + $0x38] sm:$0xff] }
  0x92   : > { %1588 = vmatprep.subr.bf16.mxu0 %v1587_v12  ;;  %1616 = vmatprep.subr.bf16.mxu1 %v1615_v26  ;;  %v351_v53 = vld [vmem:[%s2377_s8 + $0x40] sm:$0xff]  ;;  %v352_v54 = vld [vmem:[%s2377_s8 + $0x48] sm:$0xff]  ;;  %v353_v55 = vld [vmem:[%s2377_s8 + $0x50] sm:$0xff] }
  0x93   : > { %v354_v56 = vld [vmem:[%s2377_s8 + $0x58] sm:$0xff]  ;;  %v355_v57 = vld [vmem:[%s2377_s8 + $0x60] sm:$0xff]  ;;  %v356_v58 = vld [vmem:[%s2377_s8 + $0x68] sm:$0xff] }
  0x94   : > { %v357_v59 = vld [vmem:[%s2377_s8 + $0x70] sm:$0xff]  ;;  %v358_v60 = vld [vmem:[%s2377_s8 + $0x78] sm:$0xff]  ;;  %v727_v0 = vld [vmem:[#allocation8] sm:$0xff]  ;;  %s2124_s8 = smov [#allocation10]  }
  0x95   : > { %1590 = vmatpush3.bf16.msra.mxu0 %v1587_v12  ;;  %1618 = vmatpush3.bf16.msra.mxu1 %v1615_v26  ;;  %v557_v61 = vld [vmem:[#allocation7 + $0x70] sm:$0xff]  ;;  %v558_v62 = vld [vmem:[#allocation7 + $0x78] sm:$0xff]  ;;  %v728_v1 = vld [vmem:[#allocation8 + $0x8] sm:$0xff]  ;;  %s2046_s30 = sshll.u32 %s2124_s8, 4  ;;  %s2047_s30 = int_to_ptr.vmem [resolvable:$false] %s2046_s30 }
  0x96   : > { %1592 = vmatprep.subr.bf16.mxu0 %v1591_v21  ;;  %1620 = vmatprep.subr.bf16.mxu1 %v1619_v32  ;;  %v1635_v63 = vpack.c.bf16 %v558_v62, %v557_v61  ;;  %v729_v2 = vld [vmem:[#allocation8 + $0x10] sm:$0xff]  ;;  %v1639_v3 = vpack.c.bf16 %v728_v1, %v727_v0  ;;  %v730_v4 = vld [vmem:[#allocation8 + $0x18] sm:$0xff]  ;;  %v731_v6 = vld [vmem:[#allocation8 + $0x20] sm:$0xff]  ;;  %s2048_s9 = scalar_lea.vmem %s2047_s30, 4096  ;;  %p2049_p11 = scmp.lt.s32.totalorder %s2689_s21, %s2047_s30 }
  0x97   : > { %v1643_v5 = vpack.c.bf16 %v730_v4, %v729_v2  ;;  %v732_v7 = vld [vmem:[#allocation8 + $0x28] sm:$0xff]  ;;  %v733_v9 = vld [vmem:[#allocation8 + $0x30] sm:$0xff]  ;;  %v734_v10 = vld [vmem:[#allocation8 + $0x38] sm:$0xff]  ;;  %p2050_p1 = scmp.lt.s32.totalorder %s2048_s9, %s2042_s11 }
  0x98   : > { %v1647_v8 = vpack.c.bf16 %v732_v7, %v731_v6  ;;  %v1651_v11 = vpack.c.bf16 %v734_v10, %v733_v9  ;;  %v735_v12 = vld [vmem:[#allocation8 + $0x40] sm:$0xff]  ;;  %v736_v13 = vld [vmem:[#allocation8 + $0x48] sm:$0xff]  ;;  %v737_v0 = vld [vmem:[#allocation8 + $0x50] sm:$0xff] }
  0x99   : > { %1594 = vmatpush3.bf16.msra.mxu0 %v1591_v21  ;;  %1622 = vmatpush3.bf16.msra.mxu1 %v1619_v32  ;;  %v1655_v14 = vpack.c.bf16 %v736_v13, %v735_v12  ;;  %v2410_v15 = vld [vmem:[%s2737_s2] ss:$0 sm:$0xff]  ;;  %v738_v1 = vld [vmem:[#allocation8 + $0x58] sm:$0xff]  ;;  %v740_v4 = vld [vmem:[#allocation8 + $0x68] sm:$0xff]  ;;  %p2051_p2 = por %p2050_p1, %p2049_p11 }
  0x9a   : > { %1596 = vmatprep.subr.bf16.mxu0 %v1595_v27  ;;  %1624 = vmatprep.subr.bf16.mxu1 %v1623_v38  ;;  %v1659_v2 = vpack.c.bf16 %v738_v1, %v737_v0  ;;  %v741_v6 = vld [vmem:[#allocation8 + $0x70] sm:$0xff]  ;;  %v742_v7 = vld [vmem:[#allocation8 + $0x78] sm:$0xff]  ;;  %v2431_v9 = vld [vmem:[%s2739_s4] ss:$0 sm:$0xff] }
  0x9b   : > { %p2052_p4 = pnand %p2051_p2, %p2045_p7 }
  0x9d   : > { %1598 = vmatpush3.bf16.msra.mxu0 %v1595_v27  ;;  %1626 = vmatpush3.bf16.msra.mxu1 %v1623_v38 }
  0x9e   : > { %1600 = vmatprep.subr.bf16.mxu0 %v1599_v33  ;;  %1628 = vmatprep.subr.bf16.mxu1 %v1627_v42 }
  0xa1   : > { %1602 = vmatpush3.bf16.msra.mxu0 %v1599_v33  ;;  %1630 = vmatpush3.bf16.msra.mxu1 %v1627_v42 }
  0xa2   : > { %1604 = vmatprep.subr.bf16.mxu0 %v1603_v39  ;;  %1632 = vmatprep.subr.bf16.mxu1 %v1631_v46 }
  0xa5   : > { %1606 = vmatpush3.bf16.msra.mxu0 %v1603_v39  ;;  %1634 = vmatpush3.bf16.msra.mxu1 %v1631_v46 }
  0xa6   : > { %1636 = vmatprep.subr.bf16.mxu1 %v1635_v63  ;;  %1640 = vmatprep.subr.bf16.mxu0 %v1639_v3 }
  0xa8   : > { %1440 = vmatmul.mubr.f32.vlgmr.msra.gmra.mrb[0].mxu0 %v344_v45 }
  0xa9   : > { %1442 = vmatprep.mubr.f32.mxu0 %v345_v47  ;;  %1638 = vmatpush3.bf16.msra.mxu1 %v1635_v63 }
  0xaa   : > { %1671 = vmatprep.subr.bf16.mxu1 %v1639_v3  ;;  %1642 = vmatpush3.bf16.msra.mxu0 %v1639_v3 }
  0xab   : > { %1644 = vmatprep.subr.bf16.mxu0 %v1643_v5 }
  0xac   : > { %1443 = vmatmul.mubr.f32.gmra.mrb[2].mxu0 %v346_v48 }
  0xad   : > { %1445 = vmatprep.mubr.f32.mxu0 %v347_v49 }
  0xae   : > { %1646 = vmatpush3.bf16.msra.mxu0 %v1643_v5 }
  0xaf   : > { %1648 = vmatprep.subr.bf16.mxu0 %v1647_v8 }
  0xb0   : > { %1446 = vmatmul.mubr.f32.gmra.mrb[4].mxu0 %v348_v50 }
  0xb1   : > { %1448 = vmatprep.mubr.f32.mxu0 %v349_v51 }
  0xb2   : > { %1650 = vmatpush3.bf16.msra.mxu0 %v1647_v8 }
  0xb3   : > { %1652 = vmatprep.subr.bf16.mxu0 %v1651_v11 }
  0xb4   : > { %1449 = vmatmul.mubr.f32.gmra.mrb[6].mxu0 %v350_v52 }
  0xb5   : > { %1451 = vmatprep.mubr.f32.mxu0 %v351_v53 }
  0xb6   : > { %1654 = vmatpush3.bf16.msra.mxu0 %v1651_v11 }
  0xb7   : > { %1656 = vmatprep.subr.bf16.mxu0 %v1655_v14 }
  0xb8   : > { %1452 = vmatmul.mubr.f32.gmra.mrb[8].mxu0 %v352_v54 }
  0xb9   : > { %1454 = vmatprep.mubr.f32.mxu0 %v353_v55 }
  0xba   : > { %1658 = vmatpush3.bf16.msra.mxu0 %v1655_v14 }
  0xbb   : > { %1660 = vmatprep.subr.bf16.mxu0 %v1659_v2 }
  0xbc   : > { %1455 = vmatmul.mubr.f32.gmra.mrb[10].mxu0 %v354_v56 }
  0xbd   : > { %1457 = vmatprep.mubr.f32.mxu0 %v355_v57 }
  0xbe   : > { %1662 = vmatpush3.bf16.msra.mxu0 %v1659_v2 }
  0xc0   : > { %1458 = vmatmul.mubr.f32.gmra.mrb[12].mxu0 %v356_v58 }
  0xc1   : > { %1460 = vmatprep.mubr.f32.mxu0 %v357_v59 }
  0xc4   : > { %1461 = vmatmul.mubr.f32.gmra.mrb[14].mxu0 %v358_v60 }
 0x17b   : > { %v1441_v16 = vpop.f32.mrb[0].mxu0 }
 0x17c   : > { %v454_v17 = vadd.f32 %v1441_v16, %v2410_v15  ;;  %v448_v18 = vpop.f32.mrb[1].mxu0 }
 0x17d   : > { %v449_v19 = vadd.f32 %v2410_v15, %v448_v18 }
 0x17e   : > { %v528_v22 = vmax.f32 %v454_v17, 0.0 }
 0x17f   : > { %v1444_v20 = vpop.f32.mrb[2].mxu0  ;;  %v527_v21 = vmax.f32 %v449_v19, 0.0 }
 0x180   : > { %v464_v23 = vadd.f32 %v1444_v20, %v2410_v15  ;;  %v458_v24 = vpop.f32.mrb[3].mxu0 }
 0x181   : > { %v459_v25 = vadd.f32 %v2410_v15, %v458_v24  ;;  %1495 = vmatprep.mubr.f32.mxu1 %v527_v21 }
 0x182   : > { %1496 = vmatmul.mubr.f32.vlgmr.msra.gmra.mrb[0].mxu1 %v528_v22  ;;  %v530_v28 = vmax.f32 %v464_v23, 0.0 }
 0x183   : > { %v529_v26 = vmax.f32 %v459_v25, 0.0  ;;  %v1447_v27 = vpop.f32.mrb[4].mxu0  ;;  %1679 = vmatpush3.bf16.msra.mxu1 %v1639_v3  ;;  %v739_v3 = vld [vmem:[#allocation8 + $0x60] sm:$0xff] }
 0x184   : > { %v474_v29 = vadd.f32 %v1447_v27, %v2410_v15  ;;  %v468_v30 = vpop.f32.mrb[5].mxu0  ;;  %1672 = vmatprep.subr.bf16.mxu1 %v1643_v5 }
 0x185   : > { %v469_v31 = vadd.f32 %v2410_v15, %v468_v30  ;;  %1498 = vmatprep.mubr.f32.mxu1 %v529_v26 }
 0x186   : > { %v532_v32 = vmax.f32 %v474_v29, 0.0  ;;  %1499 = vmatmul.mubr.f32.gmra.mrb[2].mxu1 %v530_v28 }
 0x187   : > { %v531_v33 = vmax.f32 %v469_v31, 0.0  ;;  %v1450_v34 = vpop.f32.mrb[6].mxu0  ;;  %1680 = vmatpush3.bf16.msra.mxu1 %v1643_v5  ;;  %v1663_v5 = vpack.c.bf16 %v740_v4, %v739_v3 }
 0x188   : > { %v484_v35 = vadd.f32 %v1450_v34, %v2410_v15  ;;  %v478_v36 = vpop.f32.mrb[7].mxu0  ;;  %1673 = vmatprep.subr.bf16.mxu1 %v1647_v8 }
 0x189   : > { %v479_v37 = vadd.f32 %v2410_v15, %v478_v36  ;;  %1501 = vmatprep.mubr.f32.mxu1 %v531_v33  ;;  %1664 = vmatprep.subr.bf16.mxu0 %v1663_v5 }
 0x18a   : > { %v534_v38 = vmax.f32 %v484_v35, 0.0  ;;  %1502 = vmatmul.mubr.f32.gmra.mrb[4].mxu1 %v532_v32  ;;  %1666 = vmatpush3.bf16.msra.mxu0 %v1663_v5 }
 0x18b   : > { %v533_v39 = vmax.f32 %v479_v37, 0.0  ;;  %v1453_v40 = vpop.f32.mrb[8].mxu0  ;;  %1681 = vmatpush3.bf16.msra.mxu1 %v1647_v8  ;;  %v1667_v8 = vpack.c.bf16 %v742_v7, %v741_v6 }
 0x18c   : > { %v494_v41 = vadd.f32 %v1453_v40, %v2410_v15  ;;  %v488_v42 = vpop.f32.mrb[9].mxu0  ;;  %1674 = vmatprep.subr.bf16.mxu1 %v1651_v11 }
 0x18d   : > { %v489_v43 = vadd.f32 %v2410_v15, %v488_v42  ;;  %1504 = vmatprep.mubr.f32.mxu1 %v533_v39  ;;  %1668 = vmatprep.subr.bf16.mxu0 %v1667_v8 }
 0x18e   : > { %v536_v44 = vmax.f32 %v494_v41, 0.0  ;;  %1505 = vmatmul.mubr.f32.gmra.mrb[6].mxu1 %v534_v38  ;;  %1670 = vmatpush3.bf16.msra.mxu0 %v1667_v8 }
 0x18f   : > { %v535_v45 = vmax.f32 %v489_v43, 0.0  ;;  %v1456_v46 = vpop.f32.mrb[10].mxu0  ;;  %1682 = vmatpush3.bf16.msra.mxu1 %v1651_v11 }
 0x190   : > { %v504_v47 = vadd.f32 %v1456_v46, %v2410_v15  ;;  %v498_v48 = vpop.f32.mrb[11].mxu0  ;;  %1675 = vmatprep.subr.bf16.mxu1 %v1655_v14 }
 0x191   : > { %v499_v49 = vadd.f32 %v2410_v15, %v498_v48  ;;  %1507 = vmatprep.mubr.f32.mxu1 %v535_v45 }
 0x192   : > { %v538_v50 = vmax.f32 %v504_v47, 0.0  ;;  %1508 = vmatmul.mubr.f32.gmra.mrb[8].mxu1 %v536_v44 }
 0x193   : > { %v537_v51 = vmax.f32 %v499_v49, 0.0  ;;  %v1459_v52 = vpop.f32.mrb[12].mxu0  ;;  %1683 = vmatpush3.bf16.msra.mxu1 %v1655_v14 }
 0x194   : > { %v514_v53 = vadd.f32 %v1459_v52, %v2410_v15  ;;  %v508_v54 = vpop.f32.mrb[13].mxu0  ;;  %1676 = vmatprep.subr.bf16.mxu1 %v1659_v2 }
 0x195   : > { %v509_v55 = vadd.f32 %v2410_v15, %v508_v54  ;;  %1510 = vmatprep.mubr.f32.mxu1 %v537_v51 }
 0x196   : > { %v540_v56 = vmax.f32 %v514_v53, 0.0  ;;  %1511 = vmatmul.mubr.f32.gmra.mrb[10].mxu1 %v538_v50 }
 0x197   : > { %v539_v57 = vmax.f32 %v509_v55, 0.0  ;;  %v1462_v58 = vpop.f32.mrb[14].mxu0  ;;  %1684 = vmatpush3.bf16.msra.mxu1 %v1659_v2 }
 0x198   : > { %v524_v59 = vadd.f32 %v1462_v58, %v2410_v15  ;;  %v518_v60 = vpop.f32.mrb[15].mxu0  ;;  %1677 = vmatprep.subr.bf16.mxu1 %v1663_v5  ;;  %v2452_v58 = vld [vmem:[%s2741_s6] ss:$0 sm:$0xff] }
 0x199   : > { %v519_v61 = vadd.f32 %v2410_v15, %v518_v60  ;;  %1513 = vmatprep.mubr.f32.mxu1 %v539_v57 }
 0x19a   : > { %v542_v62 = vmax.f32 %v524_v59, 0.0  ;;  %1514 = vmatmul.mubr.f32.gmra.mrb[12].mxu1 %v540_v56 }
 0x19b   : > { %v541_v63 = vmax.f32 %v519_v61, 0.0  ;;  %1685 = vmatpush3.bf16.msra.mxu1 %v1663_v5 }
 0x19c   : > { %1678 = vmatprep.subr.bf16.mxu1 %v1667_v8 }
 0x19d   : > { %1516 = vmatprep.mubr.f32.mxu1 %v541_v63 }
 0x19e   : > { %1517 = vmatmul.mubr.f32.gmra.mrb[14].mxu1 %v542_v62 }
 0x19f   : > { %1686 = vmatpush3.bf16.msra.mxu1 %v1667_v8 }
 0x255   : > { %v1497_v10 = vpop.f32.mrb[0].mxu1 }
 0x256   : > { %v638_v11 = vadd.f32 %v1497_v10, %v2431_v9  ;;  %v632_v12 = vpop.f32.mrb[1].mxu1 }
 0x257   : > { %v633_v13 = vadd.f32 %v2431_v9, %v632_v12 }
 0x259   : > { %1768 = vtanh.f32 %v633_v13  ;;  %v1500_v14 = vpop.f32.mrb[2].mxu1 }
 0x25a   : > { %1770 = vtanh.f32 %v638_v11  ;;  %v648_v15 = vadd.f32 %v1500_v14, %v2431_v9  ;;  %v642_v16 = vpop.f32.mrb[3].mxu1 }
 0x25b   : > { %v643_v17 = vadd.f32 %v2431_v9, %v642_v16 }
 0x25d   : > { %1772 = vtanh.f32 %v643_v17  ;;  %v1503_v18 = vpop.f32.mrb[4].mxu1 }
 0x25e   : > { %1774 = vtanh.f32 %v648_v15  ;;  %v658_v19 = vadd.f32 %v1503_v18, %v2431_v9  ;;  %v652_v20 = vpop.f32.mrb[5].mxu1 }
 0x25f   : > { %v653_v21 = vadd.f32 %v2431_v9, %v652_v20 }
 0x260   : > { %1776 = vtanh.f32 %v658_v19 }
 0x261   : > { %1778 = vtanh.f32 %v653_v21  ;;  %v1506_v22 = vpop.f32.mrb[6].mxu1 }
 0x262   : > { %v668_v23 = vadd.f32 %v1506_v22, %v2431_v9  ;;  %v662_v24 = vpop.f32.mrb[7].mxu1 }
 0x263   : > { %v1769_v25 = vpop.eup %1768  ;;  %v663_v26 = vadd.f32 %v2431_v9, %v662_v24 }
 0x264   : > { %v1771_v27 = vpop.eup %1770  ;;  %1780 = vtanh.f32 %v668_v23  ;;  %1551 = vmatprep.mubr.f32.mxu0 %v1769_v25 }
 0x265   : > { %1782 = vtanh.f32 %v663_v26  ;;  %v1509_v28 = vpop.f32.mrb[8].mxu1  ;;  %1552 = vmatmul.mubr.f32.vlgmr.msra.gmra.mrb[16].mxu0 %v1771_v27 }
 0x266   : > { %v678_v29 = vadd.f32 %v1509_v28, %v2431_v9  ;;  %v672_v30 = vpop.f32.mrb[9].mxu1 }
 0x267   : > { %v1773_v31 = vpop.eup %1772  ;;  %v673_v32 = vadd.f32 %v2431_v9, %v672_v30 }
 0x268   : > { %v1775_v33 = vpop.eup %1774  ;;  %1784 = vtanh.f32 %v678_v29  ;;  %1554 = vmatprep.mubr.f32.mxu0 %v1773_v31 }
 0x269   : > { %1786 = vtanh.f32 %v673_v32  ;;  %v1512_v34 = vpop.f32.mrb[10].mxu1  ;;  %1555 = vmatmul.mubr.f32.gmra.mrb[18].mxu0 %v1775_v33 }
 0x26a   : > { %v1777_v35 = vpop.eup %1776  ;;  %v688_v36 = vadd.f32 %v1512_v34, %v2431_v9  ;;  %v682_v37 = vpop.f32.mrb[11].mxu1 }
 0x26b   : > { %v1779_v38 = vpop.eup %1778  ;;  %v683_v39 = vadd.f32 %v2431_v9, %v682_v37 }
 0x26c   : > { %1788 = vtanh.f32 %v688_v36  ;;  %1557 = vmatprep.mubr.f32.mxu0 %v1779_v38  ;;  %v975_v38 = vlaneseq }
 0x26d   : > { %1790 = vtanh.f32 %v683_v39  ;;  %v1515_v40 = vpop.f32.mrb[12].mxu1  ;;  %1558 = vmatmul.mubr.f32.gmra.mrb[20].mxu0 %v1777_v35 }
 0x26e   : > { %v1781_v41 = vpop.eup %1780  ;;  %v698_v42 = vadd.f32 %v1515_v40, %v2431_v9  ;;  %v692_v43 = vpop.f32.mrb[13].mxu1 }
 0x26f   : > { %v1783_v44 = vpop.eup %1782  ;;  %v693_v45 = vadd.f32 %v2431_v9, %v692_v43 }
 0x270   : > { %1792 = vtanh.f32 %v698_v42  ;;  %1560 = vmatprep.mubr.f32.mxu0 %v1783_v44 }
 0x271   : > { %1794 = vtanh.f32 %v693_v45  ;;  %v1518_v46 = vpop.f32.mrb[14].mxu1  ;;  %1561 = vmatmul.mubr.f32.gmra.mrb[22].mxu0 %v1781_v41 }
 0x272   : > { %v1785_v47 = vpop.eup %1784  ;;  %v708_v48 = vadd.f32 %v1518_v46, %v2431_v9  ;;  %v702_v49 = vpop.f32.mrb[15].mxu1 }
 0x273   : > { %v1787_v50 = vpop.eup %1786  ;;  %v703_v51 = vadd.f32 %v2431_v9, %v702_v49 }
 0x274   : > { %1796 = vtanh.f32 %v708_v48  ;;  %1563 = vmatprep.mubr.f32.mxu1 %v1787_v50 }
 0x275   : > { %1798 = vtanh.f32 %v703_v51  ;;  %1564 = vmatmul.mubr.f32.vlgmr.msra.gmra.mrb[16].mxu1 %v1785_v47  ;;  %v2466_v51 = vand.u32 127, %v975_v38 }
 0x276   : > { %v1789_v52 = vpop.eup %1788 }
 0x277   : > { %v1791_v53 = vpop.eup %1790  ;;  %vm977_vm0 = vcmp.lt.s32.totalorder %v2466_v51, 16 }
 0x278   : > { %1566 = vmatprep.mubr.f32.mxu1 %v1791_v53 }
 0x279   : > { %1567 = vmatmul.mubr.f32.gmra.mrb[18].mxu1 %v1789_v52 }
 0x27a   : > { %v1793_v54 = vpop.eup %1792 }
 0x27b   : > { %v1795_v55 = vpop.eup %1794 }
 0x27c   : > { %1569 = vmatprep.mubr.f32.mxu1 %v1795_v55 }
 0x27d   : > { %1570 = vmatmul.mubr.f32.gmra.mrb[20].mxu1 %v1793_v54 }
 0x27e   : > { %v1797_v56 = vpop.eup %1796 }
 0x27f   : > { %v1799_v57 = vpop.eup %1798 }
 0x280   : > { %1572 = vmatprep.mubr.f32.mxu1 %v1799_v57 }
 0x281   : > { %1573 = vmatmul.mubr.f32.gmra.mrb[22].mxu1 %v1797_v56 }
 0x338   : > { %v1553_v59 = vpop.f32.mrb[16].mxu0 }
 0x339   : > { %v822_v60 = vadd.f32 %v1553_v59, %v2452_v58  ;;  %v816_v61 = vpop.f32.mrb[17].mxu0 }
 0x33a   : > { %v817_v62 = vadd.f32 %v2452_v58, %v816_v61 }
 0x33b   : > { %v896_v63 = vsub.f32 0.0, %v822_v60 }
 0x33c   : > { %v895_v0 = vsub.f32 0.0, %v817_v62  ;;  %v1556_v1 = vpop.f32.mrb[18].mxu0 }
 0x33d   : > { %v913_v2 = vmul.f32 1.442695, %v896_v63  ;;  %v832_v3 = vadd.f32 %v1556_v1, %v2452_v58  ;;  %v826_v4 = vpop.f32.mrb[19].mxu0 }
 0x33e   : > { %v911_v5 = vmul.f32 1.442695, %v895_v0  ;;  %v827_v6 = vadd.f32 %v2452_v58, %v826_v4 }
 0x33f   : > { %1800 = vpow2.f32 %v913_v2  ;;  %v898_v7 = vsub.f32 0.0, %v832_v3 }
 0x340   : > { %1802 = vpow2.f32 %v911_v5  ;;  %v897_v8 = vsub.f32 0.0, %v827_v6  ;;  %v1559_v9 = vpop.f32.mrb[20].mxu0 }
 0x341   : > { %v917_v10 = vmul.f32 1.442695, %v898_v7  ;;  %v842_v11 = vadd.f32 %v1559_v9, %v2452_v58  ;;  %v836_v12 = vpop.f32.mrb[21].mxu0 }
 0x342   : > { %v915_v13 = vmul.f32 1.442695, %v897_v8  ;;  %v837_v14 = vadd.f32 %v2452_v58, %v836_v12 }
 0x343   : > { %1804 = vpow2.f32 %v917_v10  ;;  %v900_v15 = vsub.f32 0.0, %v842_v11 }
 0x344   : > { %1806 = vpow2.f32 %v915_v13  ;;  %v899_v16 = vsub.f32 0.0, %v837_v14  ;;  %v1562_v17 = vpop.f32.mrb[22].mxu0 }
 0x345   : > { %v921_v18 = vmul.f32 1.442695, %v900_v15  ;;  %v852_v19 = vadd.f32 %v1562_v17, %v2452_v58  ;;  %v846_v20 = vpop.f32.mrb[23].mxu0 }
 0x346   : > { %v919_v21 = vmul.f32 1.442695, %v899_v16  ;;  %v847_v22 = vadd.f32 %v2452_v58, %v846_v20 }
 0x347   : > { %1808 = vpow2.f32 %v921_v18  ;;  %v902_v23 = vsub.f32 0.0, %v852_v19 }
 0x348   : > { %1810 = vpow2.f32 %v919_v21  ;;  %v901_v24 = vsub.f32 0.0, %v847_v22  ;;  %v1565_v25 = vpop.f32.mrb[16].mxu1 }
 0x349   : > { %v1801_v26 = vpop.eup %1800  ;;  %v925_v27 = vmul.f32 1.442695, %v902_v23  ;;  %v862_v28 = vadd.f32 %v1565_v25, %v2452_v58  ;;  %v856_v29 = vpop.f32.mrb[17].mxu1 }
 0x34a   : > { %v1803_v30 = vpop.eup %1802  ;;  %v944_v31 = vadd.f32 1.0, %v1801_v26  ;;  %v923_v32 = vmul.f32 1.442695, %v901_v24  ;;  %v857_v33 = vadd.f32 %v2452_v58, %v856_v29 }
 0x34b   : > { %v943_v34 = vadd.f32 1.0, %v1803_v30  ;;  %1812 = vpow2.f32 %v925_v27  ;;  %v904_v35 = vsub.f32 0.0, %v862_v28 }
 0x34c   : > { %1814 = vrcp.f32 %v944_v31  ;;  %v903_v36 = vsub.f32 0.0, %v857_v33  ;;  %v1568_v37 = vpop.f32.mrb[18].mxu1 }
 0x34d   : > { %v1805_v39 = vpop.eup %1804  ;;  %1816 = vrcp.f32 %v943_v34  ;;  %v929_v40 = vmul.f32 1.442695, %v904_v35  ;;  %v872_v41 = vadd.f32 %v1568_v37, %v2452_v58  ;;  %v866_v42 = vpop.f32.mrb[19].mxu1 }
 0x34e   : > { %v1807_v43 = vpop.eup %1806  ;;  %v946_v44 = vadd.f32 1.0, %v1805_v39  ;;  %1818 = vpow2.f32 %v923_v32  ;;  %v927_v45 = vmul.f32 1.442695, %v903_v36  ;;  %v867_v46 = vadd.f32 %v2452_v58, %v866_v42 }
 0x34f   : > { %v945_v47 = vadd.f32 1.0, %v1807_v43  ;;  %1820 = vpow2.f32 %v929_v40  ;;  %v906_v48 = vsub.f32 0.0, %v872_v41 }
 0x350   : > { %1822 = vrcp.f32 %v946_v44  ;;  %v905_v49 = vsub.f32 0.0, %v867_v46  ;;  %v1571_v50 = vpop.f32.mrb[20].mxu1 }
 0x351   : > { %v1809_v52 = vpop.eup %1808  ;;  %1824 = vrcp.f32 %v945_v47  ;;  %v933_v53 = vmul.f32 1.442695, %v906_v48  ;;  %v882_v54 = vadd.f32 %v1571_v50, %v2452_v58  ;;  %v876_v55 = vpop.f32.mrb[21].mxu1 }
 0x352   : > { %v1811_v56 = vpop.eup %1810  ;;  %v948_v57 = vadd.f32 1.0, %v1809_v52  ;;  %1826 = vpow2.f32 %v927_v45  ;;  %v931_v59 = vmul.f32 1.442695, %v905_v49  ;;  %v877_v60 = vadd.f32 %v2452_v58, %v876_v55 }
 0x353   : > { %v947_v61 = vadd.f32 1.0, %v1811_v56  ;;  %1828 = vpow2.f32 %v933_v53  ;;  %v908_v62 = vsub.f32 0.0, %v882_v54 }
 0x354   : > { %1830 = vrcp.f32 %v948_v57  ;;  %v907_v63 = vsub.f32 0.0, %v877_v60  ;;  %v1574_v0 = vpop.f32.mrb[22].mxu1 }
 0x355   : > { %v1813_v1 = vpop.eup %1812  ;;  %1832 = vrcp.f32 %v947_v61  ;;  %v937_v2 = vmul.f32 1.442695, %v908_v62  ;;  %v892_v3 = vadd.f32 %v1574_v0, %v2452_v58  ;;  %v886_v4 = vpop.f32.mrb[23].mxu1 }
 0x356   : > { %v1815_v5 = vpop.eup %1814  ;;  %v950_v6 = vadd.f32 1.0, %v1813_v1  ;;  %1834 = vpow2.f32 %v931_v59  ;;  %v935_v7 = vmul.f32 1.442695, %v907_v63  ;;  %v887_v8 = vadd.f32 %v2452_v58, %v886_v4 }
 0x357   : > { %v1817_v9 = vpop.eup %1816  ;;  %1836 = vpow2.f32 %v937_v2  ;;  %v910_v10 = vsub.f32 0.0, %v892_v3  ;;  %v2475_v11 = vsel %vm977_vm0, %v1815_v5, -1e+30 }
 0x358   : > { %v1819_v12 = vpop.eup %1818  ;;  %v909_v13 = vsub.f32 0.0, %v887_v8  ;;  %996 = vmax.xlane.f32.xlu0 %v2475_v11  ;;  %1838 = vpow2.f32 %v935_v7  ;;  %v2484_v21 = vsel %vm977_vm0, %v1817_v9, -1e+30 }
 0x359   : > { %v1821_v14 = vpop.eup %1820  ;;  %v949_v15 = vadd.f32 1.0, %v1819_v12  ;;  %v941_v16 = vmul.f32 1.442695, %v910_v10  ;;  %1840 = vrcp.f32 %v950_v6 }
 0x35a   : > { %v1823_v17 = vpop.eup %1822  ;;  %v952_v18 = vadd.f32 1.0, %v1821_v14  ;;  %v939_v19 = vmul.f32 1.442695, %v909_v13 }
 0x35b   : > { %v1825_v58 = vpop.eup %1824  ;;  %1842 = vrcp.f32 %v949_v15  ;;  %v2480_v20 = vsel %vm977_vm0, %v1823_v17, -1e+30 }
 0x35c   : > { %v1827_v22 = vpop.eup %1826  ;;  %1844 = vrcp.f32 %v952_v18  ;;  %1000 = vmax.xlane.f32.xlu1 %v2480_v20  ;;  %994 = vmax.xlane.f32.xlu0 %v2484_v21  ;;  %v2490_v28 = vsel %vm977_vm0, %v1825_v58, -1e+30 }
 0x35d   : > { %v1829_v23 = vpop.eup %1828  ;;  %v951_v24 = vadd.f32 1.0, %v1827_v22  ;;  %1846 = vpow2.f32 %v941_v16 }
 0x35e   : > { %v1831_v25 = vpop.eup %1830  ;;  %v954_v26 = vadd.f32 1.0, %v1829_v23  ;;  %1848 = vpow2.f32 %v939_v19 }
 0x35f   : > { %v1833_v27 = vpop.eup %1832  ;;  %1850 = vrcp.f32 %v951_v24  ;;  %v2500_v35 = vsel %vm977_vm0, %v1831_v25, -1e+30 }
 0x360   : > { %v1835_v29 = vpop.eup %1834  ;;  %998 = vmax.xlane.f32.xlu1 %v2490_v28  ;;  %v2495_v30 = vsel %vm977_vm0, %v1833_v27, -1e+30  ;;  %1852 = vrcp.f32 %v954_v26 }
 0x361   : > { %v1837_v31 = vpop.eup %1836  ;;  %v953_v32 = vadd.f32 1.0, %v1835_v29  ;;  %1002 = vmax.xlane.f32.xlu0 %v2495_v30 }
 0x362   : > { %v956_v33 = vadd.f32 1.0, %v1837_v31  ;;  %v1839_v34 = vpop.eup %1838 }
 0x363   : > { %1854 = vrcp.f32 %v953_v32  ;;  %v1841_v36 = vpop.eup %1840  ;;  %v955_v37 = vadd.f32 1.0, %v1839_v34 }
 0x364   : > { %1004 = vmax.xlane.f32.xlu1 %v2500_v35  ;;  %1856 = vrcp.f32 %v956_v33  ;;  %v2510_v42 = vsel %vm977_vm0, %v1841_v36, -1e+30 }
 0x365   : > { %v1843_v38 = vpop.eup %1842  ;;  %1858 = vrcp.f32 %v955_v37 }
 0x366   : > { %v1845_v39 = vpop.eup %1844  ;;  %v2505_v40 = vsel %vm977_vm0, %v1843_v38, -1e+30 }
 0x367   : > { %v1847_v41 = vpop.eup %1846  ;;  %1006 = vmax.xlane.f32.xlu0 %v2505_v40  ;;  %v2520_v48 = vsel %vm977_vm0, %v1845_v39, -1e+30 }
 0x368   : > { %v1849_v43 = vpop.eup %1848  ;;  %v958_v44 = vadd.f32 1.0, %v1847_v41  ;;  %1008 = vmax.xlane.f32.xlu1 %v2510_v42 }
 0x369   : > { %v1851_v45 = vpop.eup %1850  ;;  %v957_v46 = vadd.f32 1.0, %v1849_v43 }
 0x36a   : > { %1860 = vrcp.f32 %v958_v44  ;;  %v2515_v47 = vsel %vm977_vm0, %v1851_v45, -1e+30  ;;  %v1853_v49 = vpop.eup %1852 }
 0x36b   : > { %1862 = vrcp.f32 %v957_v46  ;;  %1010 = vmax.xlane.f32.xlu0 %v2515_v47  ;;  %v2530_v54 = vsel %vm977_vm0, %v1853_v49, -1e+30 }
 0x36c   : > { %1012 = vmax.xlane.f32.xlu1 %v2520_v48 }
 0x36d   : > { %v1855_v50 = vpop.eup %1854 }
 0x36e   : > { %v2525_v52 = vsel %vm977_vm0, %v1855_v50, -1e+30  ;;  %v1857_v53 = vpop.eup %1856 }
 0x36f   : > { %1014 = vmax.xlane.f32.xlu0 %v2525_v52  ;;  %v1859_v55 = vpop.eup %1858  ;;  %v2540_v57 = vsel %vm977_vm0, %v1857_v53, -1e+30 }
 0x370   : > { %1016 = vmax.xlane.f32.xlu1 %v2530_v54  ;;  %v2535_v56 = vsel %vm977_vm0, %v1859_v55, -1e+30 }
 0x373   : > { %1018 = vmax.xlane.f32.xlu0 %v2535_v56 }
 0x374   : > { %v1861_v59 = vpop.eup %1860  ;;  %1020 = vmax.xlane.f32.xlu1 %v2540_v57 }
 0x375   : > { %v1863_v60 = vpop.eup %1862  ;;  %v2550_v62 = vsel %vm977_vm0, %v1861_v59, -1e+30 }
 0x376   : > { %v2545_v61 = vsel %vm977_vm0, %v1863_v60, -1e+30 }
 0x377   : > { %1022 = vmax.xlane.f32.xlu0 %v2545_v61 }
 0x378   : > { %1024 = vmax.xlane.f32.xlu1 %v2550_v62 }
 0x3e5   : > { %v997_v63 = vpop.xlane.xlu0 %996 }
 0x3e6   : > { %v1027_v0 = vsub.f32 %v2475_v11, %v997_v63 }
 0x3e8   : > { %v1044_v1 = vmul.f32 1.442695, %v1027_v0 }
 0x3e9   : > { %v1001_v2 = vpop.xlane.xlu1 %1000  ;;  %v995_v3 = vpop.xlane.xlu0 %994 }
 0x3ea   : > { %1864 = vpow2.f32 %v1044_v1  ;;  %v1029_v4 = vsub.f32 %v2480_v20, %v1001_v2  ;;  %v1026_v5 = vsub.f32 %v2484_v21, %v995_v3 }
 0x3ec   : > { %v1048_v6 = vmul.f32 1.442695, %v1029_v4  ;;  %v1042_v7 = vmul.f32 1.442695, %v1026_v5 }
 0x3ed   : > { %v999_v8 = vpop.xlane.xlu1 %998 }
 0x3ee   : > { %1866 = vpow2.f32 %v1048_v6  ;;  %v1028_v9 = vsub.f32 %v2490_v28, %v999_v8  ;;  %v1003_v10 = vpop.xlane.xlu0 %1002 }
 0x3ef   : > { %1868 = vpow2.f32 %v1042_v7  ;;  %v1030_v12 = vsub.f32 %v2495_v30, %v1003_v10 }
 0x3f0   : > { %v1046_v13 = vmul.f32 1.442695, %v1028_v9 }
 0x3f1   : > { %v1050_v11 = vmul.f32 1.442695, %v1030_v12  ;;  %v1005_v14 = vpop.xlane.xlu1 %1004 }
 0x3f2   : > { %1870 = vpow2.f32 %v1046_v13  ;;  %v1031_v15 = vsub.f32 %v2500_v35, %v1005_v14 }
 0x3f3   : > { %1872 = vpow2.f32 %v1050_v11 }
 0x3f4   : > { %v1865_v16 = vpop.eup %1864  ;;  %v1052_v17 = vmul.f32 1.442695, %v1031_v15  ;;  %v1007_v18 = vpop.xlane.xlu0 %1006 }
 0x3f5   : > { %v1032_v19 = vsub.f32 %v2505_v40, %v1007_v18  ;;  %v1009_v58 = vpop.xlane.xlu1 %1008  ;;  %v2562_v20 = vsel %vm977_vm0, %v1865_v16, 0.0 }
 0x3f6   : > { %1874 = vpow2.f32 %v1052_v17  ;;  %v1033_v21 = vsub.f32 %v2510_v42, %v1009_v58  ;;  %1092 = vadd.xlane.f32.xlu1 %v2562_v20 }
 0x3f7   : > { %v1054_v22 = vmul.f32 1.442695, %v1032_v19 }
 0x3f8   : > { %v1867_v23 = vpop.eup %1866  ;;  %v1056_v24 = vmul.f32 1.442695, %v1033_v21  ;;  %v1011_v25 = vpop.xlane.xlu0 %1010 }
 0x3f9   : > { %v1869_v26 = vpop.eup %1868  ;;  %1876 = vpow2.f32 %v1054_v22  ;;  %v1034_v27 = vsub.f32 %v2515_v47, %v1011_v25  ;;  %v1013_v28 = vpop.xlane.xlu1 %1012  ;;  %v2569_v29 = vsel %vm977_vm0, %v1867_v23, 0.0 }
 0x3fa   : > { %1878 = vpow2.f32 %v1056_v24  ;;  %v1035_v30 = vsub.f32 %v2520_v48, %v1013_v28  ;;  %1096 = vadd.xlane.f32.xlu1 %v2569_v29  ;;  %v2575_v31 = vsel %vm977_vm0, %v1869_v26, 0.0 }
 0x3fb   : > { %v1058_v32 = vmul.f32 1.442695, %v1034_v27  ;;  %1090 = vadd.xlane.f32.xlu0 %v2575_v31 }
 0x3fc   : > { %v1871_v33 = vpop.eup %1870  ;;  %v1060_v34 = vmul.f32 1.442695, %v1035_v30  ;;  %v1015_v35 = vpop.xlane.xlu0 %1014 }
 0x3fd   : > { %1880 = vpow2.f32 %v1058_v32  ;;  %v1036_v36 = vsub.f32 %v2525_v52, %v1015_v35  ;;  %v1017_v37 = vpop.xlane.xlu1 %1016  ;;  %v2581_v38 = vsel %vm977_vm0, %v1871_v33, 0.0  ;;  %v1873_v40 = vpop.eup %1872 }
 0x3fe   : > { %1882 = vpow2.f32 %v1060_v34  ;;  %v1037_v39 = vsub.f32 %v2530_v54, %v1017_v37  ;;  %v2594_v49 = vsel %vm977_vm0, %v1873_v40, 0.0 }
 0x3ff   : > { %v1062_v41 = vmul.f32 1.442695, %v1036_v36  ;;  %1094 = vadd.xlane.f32.xlu0 %v2581_v38 }
 0x400   : > { %v1875_v42 = vpop.eup %1874  ;;  %v1064_v43 = vmul.f32 1.442695, %v1037_v39  ;;  %v1019_v44 = vpop.xlane.xlu0 %1018 }
 0x401   : > { %1884 = vpow2.f32 %v1062_v41  ;;  %v1038_v45 = vsub.f32 %v2535_v56, %v1019_v44  ;;  %v1021_v46 = vpop.xlane.xlu1 %1020  ;;  %v2588_v47 = vsel %vm977_vm0, %v1875_v42, 0.0 }
 0x402   : > { %1886 = vpow2.f32 %v1064_v43  ;;  %v1039_v48 = vsub.f32 %v2540_v57, %v1021_v46  ;;  %1100 = vadd.xlane.f32.xlu1 %v2588_v47 }
 0x403   : > { %v1877_v50 = vpop.eup %1876  ;;  %v1066_v52 = vmul.f32 1.442695, %v1038_v45  ;;  %1098 = vadd.xlane.f32.xlu0 %v2594_v49 }
 0x404   : > { %v1879_v53 = vpop.eup %1878  ;;  %v1068_v54 = vmul.f32 1.442695, %v1039_v48  ;;  %v1023_v55 = vpop.xlane.xlu0 %1022  ;;  %v2606_v63 = vsel %vm977_vm0, %v1877_v50, 0.0 }
 0x405   : > { %1888 = vpow2.f32 %v1066_v52  ;;  %v1040_v56 = vsub.f32 %v2545_v61, %v1023_v55  ;;  %v1025_v59 = vpop.xlane.xlu1 %1024  ;;  %v2600_v57 = vsel %vm977_vm0, %v1879_v53, 0.0 }
 0x406   : > { %1890 = vpow2.f32 %v1068_v54  ;;  %v1041_v60 = vsub.f32 %v2550_v62, %v1025_v59  ;;  %1104 = vadd.xlane.f32.xlu1 %v2600_v57 }
 0x407   : > { %v1881_v0 = vpop.eup %1880  ;;  %v1070_v1 = vmul.f32 1.442695, %v1040_v56  ;;  %1102 = vadd.xlane.f32.xlu0 %v2606_v63 }
 0x408   : > { %v1883_v2 = vpop.eup %1882  ;;  %v1072_v61 = vmul.f32 1.442695, %v1041_v60  ;;  %v2616_v62 = vsel %vm977_vm0, %v1881_v0, 0.0 }
 0x409   : > { %1892 = vpow2.f32 %v1070_v1  ;;  %v2611_v3 = vsel %vm977_vm0, %v1883_v2, 0.0 }
 0x40a   : > { %1894 = vpow2.f32 %v1072_v61  ;;  %1108 = vadd.xlane.f32.xlu1 %v2611_v3 }
 0x40b   : > { %v1885_v4 = vpop.eup %1884  ;;  %1106 = vadd.xlane.f32.xlu0 %v2616_v62 }
 0x40c   : > { %v1887_v5 = vpop.eup %1886  ;;  %v2626_v7 = vsel %vm977_vm0, %v1885_v4, 0.0 }
 0x40d   : > { %v2621_v6 = vsel %vm977_vm0, %v1887_v5, 0.0 }
 0x40e   : > { %1112 = vadd.xlane.f32.xlu1 %v2621_v6 }
 0x40f   : > { %v1889_v8 = vpop.eup %1888  ;;  %1110 = vadd.xlane.f32.xlu0 %v2626_v7 }
 0x410   : > { %v1891_v9 = vpop.eup %1890  ;;  %v2636_v12 = vsel %vm977_vm0, %v1889_v8, 0.0 }
 0x411   : > { %v2631_v10 = vsel %vm977_vm0, %v1891_v9, 0.0 }
 0x412   : > { %1116 = vadd.xlane.f32.xlu1 %v2631_v10 }
 0x413   : > { %v1893_v13 = vpop.eup %1892  ;;  %1114 = vadd.xlane.f32.xlu0 %v2636_v12 }
 0x414   : > { %v1895_v11 = vpop.eup %1894  ;;  %v2646_v15 = vsel %vm977_vm0, %v1893_v13, 0.0 }
 0x415   : > { %v2641_v14 = vsel %vm977_vm0, %v1895_v11, 0.0 }
 0x416   : > { %1120 = vadd.xlane.f32.xlu1 %v2641_v14 }
 0x417   : > { %1118 = vadd.xlane.f32.xlu0 %v2646_v15 }
 0x483   : > { %v1093_v16 = vpop.xlane.xlu1 %1092 }
 0x484   : > { %1896 = vrcp.f32 %v1093_v16 }
 0x487   : > { %v1097_v17 = vpop.xlane.xlu1 %1096 }
 0x488   : > { %1898 = vrcp.f32 %v1097_v17  ;;  %v1091_v18 = vpop.xlane.xlu0 %1090 }
 0x489   : > { %1900 = vrcp.f32 %v1091_v18 }
 0x48c   : > { %v1095_v19 = vpop.xlane.xlu0 %1094 }
 0x48d   : > { %1902 = vrcp.f32 %v1095_v19 }
 0x48e   : > { %v1897_v58 = vpop.eup %1896 }
 0x48f   : > { %v1139_v21 = vmul.f32 %v1897_v58, %v2562_v20  ;;  %v1101_v22 = vpop.xlane.xlu1 %1100 }
 0x490   : > { %1904 = vrcp.f32 %v1101_v22  ;;  %v1099_v23 = vpop.xlane.xlu0 %1098 }
 0x491   : > { %1155 = vst [vmem:[%s2652_s12 + $0x8] sm:$0xff] %v1139_v21  ;;  %1906 = vrcp.f32 %v1099_v23 }
 0x492   : > { %v1899_v51 = vpop.eup %1898 }
 0x493   : > { %v1901_v24 = vpop.eup %1900  ;;  %v1141_v25 = vmul.f32 %v1899_v51, %v2569_v29  ;;  %v1105_v26 = vpop.xlane.xlu1 %1104 }
 0x494   : > { %v1138_v27 = vmul.f32 %v1901_v24, %v2575_v31  ;;  %1908 = vrcp.f32 %v1105_v26  ;;  %v1103_v20 = vpop.xlane.xlu0 %1102 }
 0x495   : > { %1157 = vst [vmem:[%s2652_s12 + $0x18] sm:$0xff] %v1141_v25  ;;  %1910 = vrcp.f32 %v1103_v20 }
 0x496   : > { %1154 = vst [vmem:[%s2652_s12] sm:$0xff] %v1138_v27 }
 0x497   : > { %v1903_v28 = vpop.eup %1902  ;;  %v1109_v30 = vpop.xlane.xlu1 %1108 }
 0x498   : > { %v1140_v32 = vmul.f32 %v1903_v28, %v2581_v38  ;;  %1912 = vrcp.f32 %v1109_v30  ;;  %v1107_v33 = vpop.xlane.xlu0 %1106 }
 0x499   : > { %1914 = vrcp.f32 %v1107_v33 }
 0x49a   : > { %v1905_v34 = vpop.eup %1904  ;;  %1156 = vst [vmem:[%s2652_s12 + $0x10] sm:$0xff] %v1140_v32 }
 0x49b   : > { %v1907_v29 = vpop.eup %1906  ;;  %v1143_v31 = vmul.f32 %v1905_v34, %v2588_v47  ;;  %v1113_v35 = vpop.xlane.xlu1 %1112 }
 0x49c   : > { %v1142_v36 = vmul.f32 %v1907_v29, %v2594_v49  ;;  %1916 = vrcp.f32 %v1113_v35  ;;  %v1111_v37 = vpop.xlane.xlu0 %1110 }
 0x49d   : > { %1159 = vst [vmem:[%s2652_s12 + $0x28] sm:$0xff] %v1143_v31  ;;  %1918 = vrcp.f32 %v1111_v37 }
 0x49e   : > { %v1909_v39 = vpop.eup %1908  ;;  %1158 = vst [vmem:[%s2652_s12 + $0x20] sm:$0xff] %v1142_v36 }
 0x49f   : > { %v1911_v38 = vpop.eup %1910  ;;  %v1145_v40 = vmul.f32 %v1909_v39, %v2600_v57  ;;  %v1117_v41 = vpop.xlane.xlu1 %1116 }
 0x4a0   : > { %v1144_v42 = vmul.f32 %v1911_v38, %v2606_v63  ;;  %1920 = vrcp.f32 %v1117_v41  ;;  %v1115_v43 = vpop.xlane.xlu0 %1114 }
 0x4a1   : > { %1161 = vst [vmem:[%s2652_s12 + $0x38] sm:$0xff] %v1145_v40  ;;  %1922 = vrcp.f32 %v1115_v43 }
 0x4a2   : > { %v1913_v44 = vpop.eup %1912  ;;  %1160 = vst [vmem:[%s2652_s12 + $0x30] sm:$0xff] %v1144_v42 }
 0x4a3   : > { %v1915_v45 = vpop.eup %1914  ;;  %v1147_v46 = vmul.f32 %v1913_v44, %v2611_v3  ;;  %v1121_v47 = vpop.xlane.xlu1 %1120 }
 0x4a4   : > { %v1146_v48 = vmul.f32 %v1915_v45, %v2616_v62  ;;  %1924 = vrcp.f32 %v1121_v47  ;;  %v1119_v49 = vpop.xlane.xlu0 %1118 }
 0x4a5   : > { %1163 = vst [vmem:[%s2652_s12 + $0x48] sm:$0xff] %v1147_v46  ;;  %1926 = vrcp.f32 %v1119_v49 }
 0x4a6   : > { %v1917_v50 = vpop.eup %1916  ;;  %1162 = vst [vmem:[%s2652_s12 + $0x40] sm:$0xff] %v1146_v48 }
 0x4a7   : > { %v1919_v52 = vpop.eup %1918  ;;  %v1149_v53 = vmul.f32 %v1917_v50, %v2621_v6 }
 0x4a8   : > { %v1148_v54 = vmul.f32 %v1919_v52, %v2626_v7 }
 0x4a9   : > { %1165 = vst [vmem:[%s2652_s12 + $0x58] sm:$0xff] %v1149_v53 }
 0x4aa   : > { %v1921_v55 = vpop.eup %1920  ;;  %1164 = vst [vmem:[%s2652_s12 + $0x50] sm:$0xff] %v1148_v54 }
 0x4ab   : > { %v1923_v56 = vpop.eup %1922  ;;  %v1151_v59 = vmul.f32 %v1921_v55, %v2631_v10 }
 0x4ac   : > { %v1150_v57 = vmul.f32 %v1923_v56, %v2636_v12 }
 0x4ad   : > { %1167 = vst [vmem:[%s2652_s12 + $0x68] sm:$0xff] %v1151_v59 }
 0x4ae   : > { %v1925_v60 = vpop.eup %1924  ;;  %1166 = vst [vmem:[%s2652_s12 + $0x60] sm:$0xff] %v1150_v57 }
 0x4af   : > { %v1927_v63 = vpop.eup %1926  ;;  %v1153_v0 = vmul.f32 %v1925_v60, %v2641_v14 }
 0x4b0   : > { %v1152_v1 = vmul.f32 %v1927_v63, %v2646_v15 }
 0x4b1   : > { %1169 = vst [vmem:[%s2652_s12 + $0x78] sm:$0xff] %v1153_v0 }
 0x4b2   : > { %1168 = vst [vmem:[%s2652_s12 + $0x70] sm:$0xff] %v1152_v1 }
 0x4b3   : > { %2055 = shalt.err (!%p2052_p4)
}
 0x4b4   : > { %s2056_s13 = scalar_lea.hbm %s2687_s23, 2048  ;;  %s2060_s14 = scalar_lea.hbm %s2742_s7, 8192 }
 0x4b5   : > { %p2057_p9 = scmp.ne.s32.totalorder %s2687_s23, %s2056_s13  ;;  %p2061_p8 = scmp.lt.u32.totalorder %s2687_s23, %s2742_s7 }
 0x4b6   : > { %p2062_p12 = scmp.lt.u32.totalorder %s2060_s14, %s2056_s13  ;;  %p2064_p0 = scmp.lt.u32.totalorder %s2056_s13, %s2687_s23 }
 0x4b7   : > { %p2058_p13 = pnand %p2057_p9, %p2320_p5 }
 0x4b8   : > { %p2063_p6 = por %p2062_p12, %p2061_p8 }
 0x4b9   : > { %p2059_p10 = pneg %p2058_p13 }
 0x4ba   : > { %p2065_p3 = por %p2064_p0, %p2063_p6 }
 0x4bc   : > { %p2066_p7 = pnand %p2065_p3, %p2059_p10 }
 0x4be   : > { %2069 = shalt.err (!%p2066_p7)
}
 0x4bf   : > { %s2125_s16 = smov 128   ;;  %s2126_s29 = smov 8  }
 0x4c0   : > { %1701 = dma.vmem_to_hbm [thread:$0]  (%p2320_p5), %s2689_s21, 2048, %s2687_s23, %s1171_s28, %s2125_s16, %s2125_s16, %s2126_s29  }
 0x4c1 PF: > { %s2762_s11 = sld [smem:[#allocation15_spill]]  ;;  %p1728_p11 = scmp.ge.s32.totalorder %s2116_s27, 2 }
 0x4c2   : > { %s1199_s8 = sand.u32 1, %s2104_s24  }
 0x4c3   : > { %s1200_s30 = scalar_lea.sflag [#allocation4], %s1199_s8 }
 0x4c7   : > { %p2763_p1 = scmp.ne.s32.totalorder %s2762_s11, 0 }
 0x4c9   : > { %p1718_p2 = pnand %p1728_p11, %p2763_p1 }
 0x4cb   : > { %2099 = dma.done.wait (!%p1718_p2), %s1200_s30, 2048  }
 0x4cc   : > { %2101 = vsyncadd (!%p1718_p2), %s1200_s30, 4294965248  ;;  %p22_p4 = scmp.ge.s32.totalorder %s2306_s22, 6   ;;  %s2764_s24 = smov %s2108_s25 }
 0x4cd   : > { %s2765_s25 = smov %s2112_s26  ;;  %s2766_s26 = smov %s2316_s18 }
 0x4ce   : > { %s2767_s27 = smov %s2306_s22  ;;  %24 = sbr.rel (!%p22_p4) target bundleno = 7 (0x7), region = 105 }
 0x4d5   :  { %1205 = vsyncpa [#allocation3], 1 }
 0x4d6   :  { %1207 = vsyncpa [#allocation3 + $0x1], 1 }
 0x4d7   :  { %1208 = vsyncpa [#allocation6], 1 }
 0x4d8   :  { %1209 = vsyncpa [#allocation9], 1 }
 0x4d9   :  { %1210 = vsyncpa [#allocation4], 1 }
 0x4da   :  { %1212 = vsyncpa [#allocation4 + $0x1], 1 }

</bundles_post_ra>
